<compile_context>
chip_gen: v7x
topology: tpu7x:2x2x1
jax: 0.10.0
libtpu: 0.0.40
codegen_flags: <defaults>
</compile_context>

<pallas_src>
import functools

import jax
import jax.numpy as jnp
from jax.experimental import pallas as pl
from jax.experimental.pallas import tpu as pltpu


def _rmsnorm_kernel(x_ref, w_ref, o_ref, *, eps, inv_d):
    """One tile of tokens: RMS-normalize along the last dim and scale."""
    x = x_ref[...].astype(jnp.float32)                       # (tm, D)
    ms = jnp.sum(x * x, axis=-1, keepdims=True) * inv_d      # (tm, 1) XLU reduce + mul
    inv = jax.lax.rsqrt(ms + eps)                            # EUP rsqrt (free slot)
    w = w_ref[...].astype(jnp.float32)                       # (1, D) -> broadcast
    o_ref[...] = (x * inv * (1.0 + w)).astype(o_ref.dtype)


def gemma2_rmsnorm(
    x,
    weight,
    *,
    eps: float = 1e-6,
    max_tm: int = 1024,
    vmem_budget_bytes: int = 10 * 1024 * 1024,
):
    """x: [..., D]; weight: [D]. Returns same shape/dtype as x."""
    orig_shape = x.shape
    D = x.shape[-1]
    assert weight.shape == (D,), "weight must be shape (dim,)"

    x2d = x.reshape(-1, D)
    M = x2d.shape[0]

    # Sublane granularity depends on dtype packing: 8 (32-bit), 16 (16-bit), 32 (8-bit).
    itemsize = jnp.dtype(x.dtype).itemsize
    sub = {4: 8, 2: 16, 1: 32}.get(itemsize, 8)

    # Size the token tile from a VMEM budget:
    #   2x double-buffered input + 2x double-buffered output + ~2 f32 temporaries.
    bytes_per_row = D * (4 * itemsize + 2 * 4)
    tm = min(max_tm, max(sub, vmem_budget_bytes // bytes_per_row))
    tm = max(sub, (tm // sub) * sub)
    # Don't use a tile bigger than the (sublane-rounded) input needs.
    tm = min(tm, pl.cdiv(M, sub) * sub)

    w2d = weight.reshape(1, D)

    out2d = pl.pallas_call(
        functools.partial(_rmsnorm_kernel, eps=eps, inv_d=1.0 / D),
        out_shape=jax.ShapeDtypeStruct((M, D), x.dtype),
        grid_spec=pltpu.PrefetchScalarGridSpec(
            num_scalar_prefetch=0,
            grid=(pl.cdiv(M, tm),),               # ragged M handled by masked boundary block
            in_specs=[
                pl.BlockSpec((tm, D), lambda i: (i, 0)),   # x tile (streamed)
                pl.BlockSpec((1, D), lambda i: (0, 0)),    # weight (resident, tiny)
            ],
            out_specs=pl.BlockSpec((tm, D), lambda i: (i, 0)),
        ),
        compiler_params=pltpu.CompilerParams(
            dimension_semantics=("parallel",),
            vmem_limit_bytes=32 * 1024 * 1024,
        ),
    )(x2d, w2d)

    return out2d.reshape(orig_shape)


def _reference(x, weight, eps=1e-6):
    xf = x.astype(jnp.float32)
    ms = jnp.mean(xf * xf, axis=-1, keepdims=True)
    out = xf * jax.lax.rsqrt(ms + eps)
    out = out * (1.0 + weight.astype(jnp.float32))
    return out.astype(x.dtype)


if __name__ == "__main__":
    # Small config consistent with the module (a transformer hidden dim).
    B, S, D = 2, 8, 256

    key = jax.random.PRNGKey(0)
    kx, kw = jax.random.split(key)

    x = jax.random.normal(kx, (B, S, D), dtype=jnp.float32)
    # Gemma2 initializes weight to zeros (scale = 1 + weight); use small random
    # values so the scaling path is actually exercised.
    weight = jax.random.normal(kw, (D,), dtype=jnp.float32) * 0.1

    # f32 path
    out = jax.block_until_ready(gemma2_rmsnorm(x, weight, eps=1e-6))
    ref = _reference(x, weight, eps=1e-6)
    assert out.shape == x.shape and out.dtype == x.dtype
    assert jnp.allclose(out, ref, atol=1e-5, rtol=1e-5), "f32 mismatch vs reference"

    # bf16 path (forward computes in f32 internally, then casts back — type_as).
    x_bf = x.astype(jnp.bfloat16)
    out_bf = jax.block_until_ready(gemma2_rmsnorm(x_bf, weight, eps=1e-6))
    ref_bf = _reference(x_bf, weight, eps=1e-6)
    assert out_bf.shape == x_bf.shape and out_bf.dtype == jnp.bfloat16
    assert jnp.allclose(out_bf.astype(jnp.float32), ref_bf.astype(jnp.float32),
                        atol=2e-2, rtol=2e-2), "bf16 mismatch vs reference"

    # Ragged token count (exercises the masked boundary-block path: M=15 rows).
    x_odd = jax.random.normal(kx, (3, 5, D), dtype=jnp.float32)
    out_odd = jax.block_until_ready(gemma2_rmsnorm(x_odd, weight, eps=1e-6))
    assert jnp.allclose(out_odd, _reference(x_odd, weight), atol=1e-5, rtol=1e-5)

    print("KERNEL_OK")
</pallas_src>

<mosaic_0001>
module attributes {stable_mosaic.version = 11 : i64} {
  func.func @_rmsnorm_kernel(%arg0: i32, %arg1: memref<16x256xf32, #tpu.memory_space<vmem>>, %arg2: memref<1x256xf32, #tpu.memory_space<vmem>>, %arg3: memref<16x256xf32, #tpu.memory_space<vmem>>) attributes {dimension_semantics = [#tpu.dimension_semantics<parallel>], iteration_bounds = array<i64: 1>, scalar_prefetch = 0 : i64, scratch_operands = 0 : i64, tpu.core_type = #tpu.core_type<tc>, window_params = [{transform_indices = @transform_0, window_bounds = array<i64: 16, 256>}, {pipeline_mode = #tpu.pipeline_mode<synchronous>, transform_indices = @transform_1, window_bounds = array<i64: 1, 256>}, {transform_indices = @transform_2, window_bounds = array<i64: 16, 256>}]} {
    %c0 = arith.constant 0 : index
    %c0_0 = arith.constant 0 : index
    %0 = vector.load %arg1[%c0, %c0_0] : memref<16x256xf32, #tpu.memory_space<vmem>>, vector<16x256xf32>
    %1 = arith.mulf %0, %0 : vector<16x256xf32>
    %cst = arith.constant dense<0.000000e+00> : vector<16xf32>
    %2 = vector.multi_reduction <add>, %1, %cst [1] : vector<16x256xf32> to vector<16xf32>
    %3 = vector.shape_cast %2 : vector<16xf32> to vector<16x1xf32>
    %cst_1 = arith.constant 3.906250e-03 : f32
    %4 = vector.broadcast %cst_1 : f32 to vector<16x1xf32>
    %5 = arith.mulf %3, %4 : vector<16x1xf32>
    %cst_2 = arith.constant 9.99999997E-7 : f32
    %6 = vector.broadcast %cst_2 : f32 to vector<16x1xf32>
    %7 = arith.addf %5, %6 : vector<16x1xf32>
    %8 = math.rsqrt %7 : vector<16x1xf32>
    %c0_3 = arith.constant 0 : index
    %c0_4 = arith.constant 0 : index
    %9 = vector.load %arg2[%c0_3, %c0_4] : memref<1x256xf32, #tpu.memory_space<vmem>>, vector<1x256xf32>
    %10 = vector.broadcast %8 : vector<16x1xf32> to vector<16x256xf32>
    %11 = arith.mulf %0, %10 : vector<16x256xf32>
    %cst_5 = arith.constant 1.000000e+00 : f32
    %12 = vector.broadcast %cst_5 : f32 to vector<1x256xf32>
    %13 = arith.addf %12, %9 : vector<1x256xf32>
    %14 = vector.broadcast %13 : vector<1x256xf32> to vector<16x256xf32>
    %15 = arith.mulf %11, %14 : vector<16x256xf32>
    %c0_6 = arith.constant 0 : index
    %c0_7 = arith.constant 0 : index
    %16 = vector.load %arg3[%c0_6, %c0_7] : memref<16x256xf32, #tpu.memory_space<vmem>>, vector<16x256xf32>
    tpu.vector_store %arg3[%c0_6, %c0_7], %15 {strides = array<i32>} : memref<16x256xf32, #tpu.memory_space<vmem>>, vector<16x256xf32>,
    return
  }
  func.func @transform_0(%arg0: i32) -> (i32, i32) {
    %c0_i32 = arith.constant 0 : i32
    %c0_i32_0 = arith.constant 0 : i32
    return %arg0, %c0_i32 : i32, i32
  }
  func.func @transform_1(%arg0: i32) -> (i32, i32) {
    %c0_i32 = arith.constant 0 : i32
    %c0_i32_0 = arith.constant 0 : i32
    %c0_i32_1 = arith.constant 0 : i32
    return %c0_i32, %c0_i32_0 : i32, i32
  }
  func.func @transform_2(%arg0: i32) -> (i32, i32) {
    %c0_i32 = arith.constant 0 : i32
    %c0_i32_0 = arith.constant 0 : i32
    return %arg0, %c0_i32 : i32, i32
  }
}

</mosaic_0001>

<bundles_post_ra>
// kernel: tpu_custom_call.1
= control target key start
LH: loop header
LB: loop body
LE: loop exit
PB: predicated region body
PF: predicated region fallthrough
CT: control target
= control target key end

     0   :  { %7 = vsyncpa [#allocation3], 0  ;;  %s196_s0 = inlined_call_operand.hbm [shape: f32[16,256], index: 0, kind: input, shape index: {}]   ;;  %s197_s1 = inlined_call_operand.vmem [shape: f32[1,256], index: 1, kind: input, shape index: {}]   ;;  %s198_s2 = inlined_call_operand.hbm [shape: f32[16,256], index: 2, kind: output, shape index: {}]  }
   0x1   :  { %8 = vsyncpa [#allocation4], 0  ;;  %s144_s9 = smov [#allocation2]   ;;  %s96_s13 = scalar_lea.hbm %s196_s0, 512 }
   0x2   :  { %s14_s10 = sshll.u32 %s144_s9, 4  ;;  %p97_p0 = scmp.ne.s32.totalorder %s196_s0, %s96_s13  ;;  %s15_s10 = int_to_ptr.vmem [resolvable:$true] %s14_s10 }
   0x3   :  { %p100_p1 = scmp.lt.u32.totalorder %s96_s13, %s196_s0 }
   0x5   :  { %p102_p2 = pnand %p100_p1, %p97_p0 }
   0x7   :  { %105 = shalt.err (!%p102_p2)
}
   0x8   :  { %s106_s18 = scalar_lea.vmem %s15_s10, 512  ;;  %p111_p4 = scmp.lt.s32.totalorder %s15_s10, %s15_s10 }
   0x9   :  { %p107_p3 = scmp.ne.s32.totalorder %s15_s10, %s106_s18  ;;  %p112_p5 = scmp.lt.s32.totalorder %s106_s18, %s106_s18 }
   0xb   :  { %p113_p6 = por %p112_p5, %p111_p4 }
   0xd   :  { %p114_p7 = pnand %p113_p6, %p107_p3 }
   0xf   :  { %117 = shalt.err (!%p114_p7)
}
  0x10   :  { %s145_s19 = smov 256   ;;  %s146_s20 = smov 16  }
  0x11   :  { %20 = dma.hbm_to_vmem [thread:$0]  %s196_s0, 512, %s15_s10, [#allocation3], %s145_s19, %s145_s19, %s146_s20  }
  0x12   :  { %140 = dma.done.wait [#allocation3], 512  }
  0x13   :  { %141 = vsyncadd [#allocation3], 4294966784  ;;  %v26_v0 = vld [vmem:[#allocation2] sm:$0xff]  ;;  %v27_v1 = vld [vmem:[#allocation2 + $0x8] sm:$0xff]  ;;  %v53_v12 = vlaneseq  ;;  %s147_s24 = smov [#allocation5]  }
  0x14   :  { %v28_v2 = vld [vmem:[#allocation2 + $0x10] sm:$0xff]  ;;  %v30_v3 = vmul.f32 %v26_v0, %v26_v0  ;;  %v31_v4 = vmul.f32 %v27_v1, %v27_v1  ;;  %v29_v5 = vld [vmem:[#allocation2 + $0x18] sm:$0xff]  ;;  %v46_v18 = vld [vmem:[%s197_s1] sm:$0x3]  ;;  %s76_s25 = sshll.u32 %s147_s24, 4  ;;  %s77_s25 = int_to_ptr.vmem [resolvable:$true] %s76_s25 }
  0x15   :  { %v32_v6 = vmul.f32 %v28_v2, %v28_v2  ;;  %v33_v7 = vmul.f32 %v29_v5, %v29_v5  ;;  %v54_v16 = vshrl.u32 %v53_v12, 7  ;;  %v51_v19 = vadd.f32 1.0, %v46_v18  ;;  %s118_s1 = scalar_lea.vmem %s77_s25, 512  ;;  %p123_p9 = scmp.lt.s32.totalorder %s77_s25, %s77_s25 }
  0x16   :  { %v34_v8 = vadd.f32 %v31_v4, %v30_v3  ;;  %p119_p8 = scmp.ne.s32.totalorder %s77_s25, %s118_s1  ;;  %p124_p10 = scmp.lt.s32.totalorder %s118_s1, %s118_s1 }
  0x17   :  { %v37_v9 = vadd.f32 %v33_v7, %v32_v6  ;;  %v55_v20 = vsub.s32 0, %v54_v16  ;;  %v59_v21 = vsub.s32 1, %v54_v16 }
  0x18   :  { %35 = vadd.xlane.f32.xlu0 %v34_v8  ;;  %p125_p11 = por %p124_p10, %p123_p9 }
  0x19   :  { %v56_v22 = vrot.slane %v51_v19, %v55_v20  ;;  %v60_v23 = vrot.slane %v51_v19, %v59_v21 }
  0x1a   :  { %p126_p12 = pnand %p125_p11, %p119_p8 }
  0x1c   :  { %38 = vadd.xlane.f32.xlu0 %v37_v9 }
  0xa5   :  { %v36_v10 = vpop.xlane.xlu0 %35 }
  0xa6   :  { %v40_v11 = vmul.f32 0.00390625, %v36_v10 }
  0xa8   :  { %v42_v13 = vadd.f32 1e-06, %v40_v11 }
  0xa9   :  { %v39_v14 = vpop.xlane.xlu0 %38 }
  0xaa   :  { %92 = vrsqrt.f32 %v42_v13  ;;  %v41_v15 = vmul.f32 0.00390625, %v39_v14 }
  0xac   :  { %v43_v17 = vadd.f32 1e-06, %v41_v15 }
  0xae   :  { %94 = vrsqrt.f32 %v43_v17 }
  0xb4   :  { %v93_v24 = vpop.eup %92 }
  0xb5   :  { %v47_v25 = vmul.f32 %v93_v24, %v26_v0  ;;  %v48_v26 = vmul.f32 %v93_v24, %v27_v1 }
  0xb7   :  { %v63_v27 = vmul.f32 %v56_v22, %v47_v25  ;;  %v64_v28 = vmul.f32 %v60_v23, %v48_v26 }
  0xb8   :  { %v95_v29 = vpop.eup %94 }
  0xb9   :  { %v49_v30 = vmul.f32 %v95_v29, %v28_v2  ;;  %v50_v31 = vmul.f32 %v95_v29, %v29_v5  ;;  %67 = vst [vmem:[#allocation5] sm:$0xff] %v63_v27  ;;  %68 = vst [vmem:[#allocation5 + $0x8] sm:$0xff] %v64_v28 }
  0xbb   :  { %v65_v32 = vmul.f32 %v56_v22, %v49_v30  ;;  %v66_v33 = vmul.f32 %v60_v23, %v50_v31 }
  0xbd   :  { %69 = vst [vmem:[#allocation5 + $0x10] sm:$0xff] %v65_v32  ;;  %70 = vst [vmem:[#allocation5 + $0x18] sm:$0xff] %v66_v33 }
  0xbe   :  { %129 = shalt.err (!%p126_p12)
}
  0xbf   :  { %s130_s28 = scalar_lea.hbm %s198_s2, 512 }
  0xc0   :  { %p131_p13 = scmp.ne.s32.totalorder %s198_s2, %s130_s28  ;;  %p134_p0 = scmp.lt.u32.totalorder %s130_s28, %s198_s2 }
  0xc2   :  { %p136_p1 = pnand %p134_p0, %p131_p13 }
  0xc4   :  { %139 = shalt.err (!%p136_p1)
}
  0xc5   :  { %82 = dma.vmem_to_hbm [thread:$0]  %s77_s25, 512, %s198_s2, [#allocation4], %s145_s19, %s145_s19, %s146_s20  }
  0xc6   :  { %142 = dma.done.wait [#allocation4], 512  }
  0xc7   :  { %143 = vsyncadd [#allocation4], 4294966784 }
  0xc8   :  { %86 = vsyncpa [#allocation3], 1 }
  0xc9   :  { %87 = vsyncpa [#allocation4], 1 }

</bundles_post_ra>
